<compile_context>
chip_gen: v7x
topology: tpu7x:2x2x1
jax: 0.10.0
libtpu: 0.0.40
codegen_flags: <defaults>
</compile_context>

<pallas_src>
import math

import jax
import jax.numpy as jnp
from jax.experimental import pallas as pl
from jax.experimental.pallas import tpu as pltpu


def _affine_kernel(ab_ref, x_ref, o_ref):
    # ab_ref: (2, D) resident f32 params (row 0 = alpha, row 1 = beta).
    # x_ref / o_ref: (tile_rows, D) tile of the flattened input / output.
    alpha = ab_ref[0:1, :]
    beta = ab_ref[1:2, :]
    x = x_ref[...].astype(jnp.float32)
    o_ref[...] = (x * alpha + beta).astype(o_ref.dtype)


def _sublane_multiple(dtype):
    itemsize = jnp.dtype(dtype).itemsize
    if itemsize >= 4:
        return 8
    if itemsize == 2:
        return 16
    return 32


def _default_tile_bytes():
    """Per-buffer tile byte budget tuned per TPU generation."""
    try:
        kind = jax.devices()[0].device_kind.lower()
    except Exception:
        kind = ""
    if "v5" in kind:
        return 2 * 1024 * 1024   # ~820 GB/s: 2 MiB already amortizes per-step overhead
    if "v7" in kind:
        return 6 * 1024 * 1024   # ~3.2 TB/s: bigger tiles to hide the ~0.35 us/step cost
    return 4 * 1024 * 1024       # v6e and unknown


def _pick_tile_rows(rows, d_eff, dtype, max_tile_bytes):
    """Pick tile_rows for a mem-bound elementwise kernel (cdiv grid, no padding)."""
    itemsize = jnp.dtype(dtype).itemsize
    sub = _sublane_multiple(dtype)
    budget_rows = (max_tile_bytes // max(1, d_eff * itemsize)) // sub * sub
    budget_rows = max(sub, budget_rows)
    if rows > budget_rows:
        return budget_rows
    # Fits in a single block: still split into two tiles so the "parallel"
    # grid axis can be sharded across the two TensorCores of a v7x chip.
    if rows >= 2 * sub:
        half = ((rows + 1) // 2 + sub - 1) // sub * sub
        return half
    return rows


def affine(x, alpha, beta, *, max_tile_bytes=None, tile_rows=None):
    """x: (..., D) array; alpha, beta: (D,). Returns alpha * x + beta (same dtype as x)."""
    orig_shape = x.shape
    d = orig_shape[-1]
    rows = int(math.prod(orig_shape[:-1])) if len(orig_shape) > 1 else 1
    dtype = x.dtype

    alpha = jnp.asarray(alpha, jnp.float32)
    beta = jnp.asarray(beta, jnp.float32)

    # Lane folding: fold `fold` rows into the lane axis so the last dim becomes a
    # multiple of 128 (lane-dense, unmasked stores). Only applied when no padding is
    # needed (rows % fold == 0) -- padding would cost a full extra HBM read+write.
    fold = 1
    if d % 128 != 0:
        f = 128 // math.gcd(d, 128)
        if rows % f == 0:
            fold = f
    d_eff = d * fold
    rows_eff = rows // fold

    x2 = x.reshape(rows_eff, d_eff)
    ab = jnp.stack([jnp.tile(alpha, fold), jnp.tile(beta, fold)], axis=0)  # (2, d_eff) f32

    if max_tile_bytes is None:
        max_tile_bytes = _default_tile_bytes()
    sub = _sublane_multiple(dtype)
    if tile_rows is None:
        t = _pick_tile_rows(rows_eff, d_eff, dtype, max_tile_bytes)
    else:
        t = -(-int(tile_rows) // sub) * sub  # round up to sublane multiple
        t = min(t, rows_eff)                 # full extent is always a legal block dim

    # cdiv grid: Pallas masks the out-of-bounds tail of the last block.
    grid = (pl.cdiv(rows_eff, t),)

    itemsize = jnp.dtype(dtype).itemsize
    # x + out double-buffered (~4 tiles) + resident param block + slack; clamp to 48 MiB
    # (safe within v7x's 64 MiB physical VMEM, well within v5e/v6e's 128 MiB).
    vmem_limit = int(min(48 << 20, max(24 << 20, 5 * t * d_eff * itemsize + (1 << 20))))

    out = pl.pallas_call(
        _affine_kernel,
        out_shape=jax.ShapeDtypeStruct((rows_eff, d_eff), dtype),
        grid_spec=pltpu.PrefetchScalarGridSpec(
            num_scalar_prefetch=0,
            grid=grid,
            in_specs=[
                pl.BlockSpec((2, d_eff), lambda i: (0, 0)),   # fused alpha/beta (resident)
                pl.BlockSpec((t, d_eff), lambda i: (i, 0)),   # x tile
            ],
            out_specs=pl.BlockSpec((t, d_eff), lambda i: (i, 0)),
        ),
        compiler_params=pltpu.CompilerParams(
            dimension_semantics=("parallel",),
            vmem_limit_bytes=vmem_limit,
        ),
    )(ab, x2)

    return out.reshape(orig_shape)


if __name__ == "__main__":
    key = jax.random.PRNGKey(0)

    # ResMLP-style input: (batch, seq, dim) -- matches Affine(dim).forward(x).
    B, N, D = 2, 8, 32
    x = jax.random.normal(key, (B, N, D), dtype=jnp.float32)
    alpha = jnp.ones((D,), dtype=jnp.float32)     # nn.Parameter(torch.ones(dim))
    beta = jnp.zeros((D,), dtype=jnp.float32)     # nn.Parameter(torch.zeros(dim))

    y = affine(x, alpha, beta)
    jax.block_until_ready(y)
    assert jnp.allclose(y, alpha * x + beta, atol=1e-6), "mismatch vs reference (demo)"

    # Non-trivial params + multi-tile pipelined grid path (divisible rows).
    k1, k2, k3 = jax.random.split(jax.random.PRNGKey(0), 3)
    D2 = 128
    x2 = jax.random.normal(k1, (4, 32, D2), dtype=jnp.float32)   # 128 rows
    a2 = jax.random.normal(k2, (D2,), dtype=jnp.float32)
    b2 = jax.random.normal(k3, (D2,), dtype=jnp.float32)
    y2 = affine(x2, a2, b2, tile_rows=32)                        # grid = (4,)
    jax.block_until_ready(y2)
    assert jnp.allclose(y2, a2 * x2 + b2, atol=1e-5), "mismatch vs reference (tiled)"

    # Non-128 feature dim + non-divisible row tiling: exercises generalized lane
    # folding (D=48 -> d_eff=384) and the masked partial last block of the cdiv grid.
    k4, k5, k6 = jax.random.split(jax.random.PRNGKey(1), 3)
    D3 = 48
    x3 = jax.random.normal(k4, (3, 40, D3), dtype=jnp.float32)   # 120 rows -> 15 folded rows
    a3 = jax.random.normal(k5, (D3,), dtype=jnp.float32)
    b3 = jax.random.normal(k6, (D3,), dtype=jnp.float32)
    y3 = affine(x3, a3, b3, tile_rows=8)                         # grid = (2,), partial tail
    jax.block_until_ready(y3)
    assert jnp.allclose(y3, a3 * x3 + b3, atol=1e-5), "mismatch vs reference (tail)"

    print("KERNEL_OK")
</pallas_src>

<mosaic_0001>
module attributes {stable_mosaic.version = 11 : i64} {
  func.func @_affine_kernel(%arg0: i32, %arg1: memref<2x128xf32, #tpu.memory_space<vmem>>, %arg2: memref<4x128xf32, #tpu.memory_space<vmem>>, %arg3: memref<4x128xf32, #tpu.memory_space<vmem>>) attributes {dimension_semantics = [#tpu.dimension_semantics<parallel>], iteration_bounds = array<i64: 1>, scalar_prefetch = 0 : i64, scratch_operands = 0 : i64, tpu.core_type = #tpu.core_type<tc>, window_params = [{pipeline_mode = #tpu.pipeline_mode<synchronous>, transform_indices = @transform_0, window_bounds = array<i64: 2, 128>}, {transform_indices = @transform_1, window_bounds = array<i64: 4, 128>}, {transform_indices = @transform_2, window_bounds = array<i64: 4, 128>}]} {
    %c0 = arith.constant 0 : index
    %c0_0 = arith.constant 0 : index
    %0 = vector.load %arg1[%c0, %c0_0] : memref<2x128xf32, #tpu.memory_space<vmem>>, vector<1x128xf32>
    %c1 = arith.constant 1 : index
    %c0_1 = arith.constant 0 : index
    %1 = vector.load %arg1[%c1, %c0_1] : memref<2x128xf32, #tpu.memory_space<vmem>>, vector<1x128xf32>
    %c0_2 = arith.constant 0 : index
    %c0_3 = arith.constant 0 : index
    %2 = vector.load %arg2[%c0_2, %c0_3] : memref<4x128xf32, #tpu.memory_space<vmem>>, vector<4x128xf32>
    %3 = vector.broadcast %0 : vector<1x128xf32> to vector<4x128xf32>
    %4 = arith.mulf %2, %3 : vector<4x128xf32>
    %5 = vector.broadcast %1 : vector<1x128xf32> to vector<4x128xf32>
    %6 = arith.addf %4, %5 : vector<4x128xf32>
    %c0_4 = arith.constant 0 : index
    %c0_5 = arith.constant 0 : index
    %7 = vector.load %arg3[%c0_4, %c0_5] : memref<4x128xf32, #tpu.memory_space<vmem>>, vector<4x128xf32>
    tpu.vector_store %arg3[%c0_4, %c0_5], %6 {strides = array<i32>} : memref<4x128xf32, #tpu.memory_space<vmem>>, vector<4x128xf32>,
    return
  }
  func.func @transform_0(%arg0: i32) -> (i32, i32) {
    %c0_i32 = arith.constant 0 : i32
    %c0_i32_0 = arith.constant 0 : i32
    %c0_i32_1 = arith.constant 0 : i32
    return %c0_i32, %c0_i32_0 : i32, i32
  }
  func.func @transform_1(%arg0: i32) -> (i32, i32) {
    %c0_i32 = arith.constant 0 : i32
    %c0_i32_0 = arith.constant 0 : i32
    return %arg0, %c0_i32 : i32, i32
  }
  func.func @transform_2(%arg0: i32) -> (i32, i32) {
    %c0_i32 = arith.constant 0 : i32
    %c0_i32_0 = arith.constant 0 : i32
    return %arg0, %c0_i32 : i32, i32
  }
}

</mosaic_0001>

<bundles_post_ra>
// kernel: tpu_custom_call.1
= control target key start
LH: loop header
LB: loop body
LE: loop exit
PB: predicated region body
PF: predicated region fallthrough
CT: control target
= control target key end

     0   :  { %7 = vsyncpa [#allocation3], 0  ;;  %s197_s0 = inlined_call_operand.hbm [shape: f32[2,128], index: 0, kind: input, shape index: {}]   ;;  %s198_s1 = inlined_call_operand.hbm [shape: f32[4,128], index: 1, kind: input, shape index: {}]   ;;  %s199_s2 = inlined_call_operand.hbm [shape: f32[4,128], index: 2, kind: output, shape index: {}]  }
   0x1   :  { %8 = vsyncpa [#allocation6], 0 }
   0x2   :  { %9 = vsyncpa [#allocation4], 0  ;;  %s143_s9 = smov [#allocation2]   ;;  %s144_s11 = smov [#allocation5]  }
   0x3   :  { %s16_s10 = sshll.u32 %s143_s9, 4  ;;  %s26_s12 = sshll.u32 %s144_s11, 4  ;;  %s17_s10 = int_to_ptr.vmem [resolvable:$true] %s16_s10  ;;  %s27_s12 = int_to_ptr.vmem [resolvable:$true] %s26_s12 }
   0x4   :  { %s71_s15 = scalar_lea.hbm %s197_s0, 32 }
   0x5   :  { %p72_p0 = scmp.ne.s32.totalorder %s197_s0, %s71_s15  ;;  %p75_p1 = scmp.lt.u32.totalorder %s71_s15, %s197_s0 }
   0x7   :  { %p77_p2 = pnand %p75_p1, %p72_p0 }
   0x9   :  { %80 = shalt.err (!%p77_p2)
}
   0xa   :  { %s81_s20 = scalar_lea.vmem %s17_s10, 32  ;;  %p86_p4 = scmp.lt.s32.totalorder %s17_s10, %s17_s10 }
   0xb   :  { %p82_p3 = scmp.ne.s32.totalorder %s17_s10, %s81_s20  ;;  %p87_p5 = scmp.lt.s32.totalorder %s81_s20, %s81_s20 }
   0xd   :  { %p88_p6 = por %p87_p5, %p86_p4 }
   0xf   :  { %p89_p7 = pnand %p88_p6, %p82_p3 }
  0x11   :  { %92 = shalt.err (!%p89_p7)
}
  0x12   :  { %19 = dma.hbm_to_vmem [thread:$0]  %s197_s0, 32, %s17_s10, [#allocation3]  }
  0x13   :  { %s93_s25 = scalar_lea.hbm %s198_s1, 64 }
  0x14   :  { %p94_p8 = scmp.ne.s32.totalorder %s198_s1, %s93_s25  ;;  %p97_p9 = scmp.lt.u32.totalorder %s93_s25, %s198_s1 }
  0x16   :  { %p99_p10 = pnand %p97_p9, %p94_p8 }
  0x18   :  { %102 = shalt.err (!%p99_p10)
}
  0x19   :  { %s103_s30 = scalar_lea.vmem %s27_s12, 64  ;;  %p108_p12 = scmp.lt.s32.totalorder %s27_s12, %s27_s12 }
  0x1a   :  { %p104_p11 = scmp.ne.s32.totalorder %s27_s12, %s103_s30  ;;  %p109_p13 = scmp.lt.s32.totalorder %s103_s30, %s103_s30 }
  0x1c   :  { %p110_p0 = por %p109_p13, %p108_p12 }
  0x1e   :  { %p111_p1 = pnand %p110_p0, %p104_p11 }
  0x20   :  { %114 = shalt.err (!%p111_p1)
}
  0x21   :  { %29 = dma.hbm_to_vmem [thread:$0]  %s198_s1, 64, %s27_s12, [#allocation6]  }
  0x22   :  { %137 = dma.done.wait [#allocation3], 32  }
  0x23   :  { %138 = vsyncadd [#allocation3], 4294967264 }
  0x24   :  { %139 = dma.done.wait [#allocation6], 64  }
  0x25   :  { %140 = vsyncadd [#allocation6], 4294967232  ;;  %s145_s4 = smov [#allocation7]   ;;  %v66_v0 = vld [vmem:[#allocation2] ss:$0 sm:$0xff] }
  0x26   :  { %s56_s5 = sshll.u32 %s145_s4, 4  ;;  %v67_v1 = vld [vmem:[#allocation2 + $0x1] ss:$0 sm:$0xff]  ;;  %v38_v2 = vld [vmem:[#allocation5] sm:$0xf]  ;;  %s57_s5 = int_to_ptr.vmem [resolvable:$true] %s56_s5 }
  0x27   :  { %v43_v3 = vmul.f32 %v66_v0, %v38_v2  ;;  %s115_s6 = scalar_lea.vmem %s57_s5, 64  ;;  %p120_p3 = scmp.lt.s32.totalorder %s57_s5, %s57_s5 }
  0x28   :  { %p116_p2 = scmp.ne.s32.totalorder %s57_s5, %s115_s6  ;;  %p121_p4 = scmp.lt.s32.totalorder %s115_s6, %s115_s6 }
  0x29   :  { %v48_v4 = vadd.f32 %v67_v1, %v43_v3 }
  0x2a   :  { %p122_p5 = por %p121_p4, %p120_p3 }
  0x2b   :  { %49 = vst [vmem:[#allocation7] sm:$0xf] %v48_v4 }
  0x2c   :  { %p123_p6 = pnand %p122_p5, %p116_p2 }
  0x2e   :  { %126 = shalt.err (!%p123_p6)
}
  0x2f   :  { %s127_s8 = scalar_lea.hbm %s199_s2, 64 }
  0x30   :  { %p128_p7 = scmp.ne.s32.totalorder %s199_s2, %s127_s8  ;;  %p131_p8 = scmp.lt.u32.totalorder %s127_s8, %s199_s2 }
  0x32   :  { %p133_p9 = pnand %p131_p8, %p128_p7 }
  0x34   :  { %136 = shalt.err (!%p133_p9)
}
  0x35   :  { %59 = dma.vmem_to_hbm [thread:$0]  %s57_s5, 64, %s199_s2, [#allocation4]  }
  0x36   :  { %141 = dma.done.wait [#allocation4], 64  }
  0x37   :  { %142 = vsyncadd [#allocation4], 4294967232 }
  0x38   :  { %63 = vsyncpa [#allocation3], 1 }
  0x39   :  { %64 = vsyncpa [#allocation6], 1 }
  0x3a   :  { %65 = vsyncpa [#allocation4], 1 }

</bundles_post_ra>
